<compile_context>
chip_gen: v7x
topology: tpu7x:2x2x1
jax: 0.10.0
libtpu: 0.0.40
codegen_flags: <defaults>
</compile_context>

<pallas_src>
import math

import jax
import jax.numpy as jnp
from jax.experimental import pallas as pl
from jax.experimental.pallas import tpu as pltpu


def _bce_logits_kernel(x_ref, t_ref, o_ref):
    x = x_ref[...].astype(jnp.float32)
    t = t_ref[...].astype(jnp.float32)
    # max(x, 0) - x*t + log1p(exp(-|x|))
    loss = jnp.maximum(x, 0.0) - x * t + jnp.log1p(jnp.exp(-jnp.abs(x)))
    o_ref[...] = loss.astype(o_ref.dtype)


def _round_up(x, m):
    return (x + m - 1) // m * m


def bce_with_logits_loss(logits, targets, *, lane=512, target_block_bytes=4 << 20):
    """BCEWithLogitsLoss(reduction='none'): elementwise loss, same shape/dtype as input."""
    assert logits.shape == targets.shape, "input/target shape mismatch"
    orig_shape = logits.shape
    out_dtype = logits.dtype
    n = math.prod(orig_shape)
    if n == 0:
        return jnp.zeros(orig_shape, dtype=out_dtype)

    itemsize = jnp.dtype(out_dtype).itemsize
    # Dtype-aware sublane tile: f32 -> 8, bf16 -> 16, int8/fp8 -> 32.
    sub = 8 * max(1, 4 // itemsize)

    lane = _round_up(lane, 128)

    # Minimal padding: only up to a multiple of `lane` so we can present a
    # lane-dense 2D view.  Ragged rows are handled by Pallas boundary clipping,
    # NOT by padding to block_rows * lane.
    n_padded = _round_up(n, lane)
    rows = n_padded // lane

    if rows <= sub:
        # Tiny input: single block equal to the (sublane-tile padded) array.
        block_rows = sub
        rows_padded = sub
    else:
        # Block sized for ~target_block_bytes per input, multiple of the packed
        # sublane tile so interior loads/stores are unmasked.
        block_rows = max(sub, (target_block_bytes // (lane * itemsize)) // sub * sub)
        # Guarantee >= 2 grid steps so both v7x TensorCores stream.
        half = _round_up(pl.cdiv(rows, 2), sub)
        block_rows = min(block_rows, half)
        rows_padded = rows  # ragged final block handled in-grid via clipping

    n_padded = rows_padded * lane
    grid = (pl.cdiv(rows_padded, block_rows),)

    def _as_2d(a):
        a = a.reshape(-1)
        if n_padded != n:
            a = jnp.pad(a, (0, n_padded - n))
        return a.reshape(rows_padded, lane)

    x2d = _as_2d(logits)
    t2d = _as_2d(targets)

    blk = pl.BlockSpec((block_rows, lane), lambda i: (i, 0))

    block_bytes = block_rows * lane * itemsize
    # 2 inputs + 1 output, double buffered, plus a little headroom; raise the
    # scoped-VMEM limit explicitly so 4 MiB blocks are accepted on v5e too.
    vmem_limit = min(max(6 * block_bytes + (2 << 20), 16 << 20), 48 << 20)

    out2d = pl.pallas_call(
        _bce_logits_kernel,
        out_shape=jax.ShapeDtypeStruct((rows_padded, lane), out_dtype),
        grid=grid,
        in_specs=[blk, blk],
        out_specs=blk,
        compiler_params=pltpu.CompilerParams(
            dimension_semantics=("parallel",),
            vmem_limit_bytes=vmem_limit,
        ),
        cost_estimate=pl.CostEstimate(
            flops=5 * n,
            transcendentals=2 * n,
            bytes_accessed=3 * n_padded * itemsize,
        ),
    )(x2d, t2d)

    out_flat = out2d.reshape(-1)
    if n_padded != n:
        out_flat = out_flat[:n]
    return out_flat.reshape(orig_shape)


def bce_with_logits_loss_ref(logits, targets):
    x = logits.astype(jnp.float32)
    t = targets.astype(jnp.float32)
    return (jnp.maximum(x, 0.0) - x * t + jnp.log1p(jnp.exp(-jnp.abs(x)))).astype(
        logits.dtype
    )


if __name__ == "__main__":
    num_classes = 64
    batch = 16

    key = jax.random.PRNGKey(0)
    k1, k2, k3, k4 = jax.random.split(key, 4)
    logits = jax.random.normal(k1, (batch, num_classes), dtype=jnp.float32) * 3.0
    # targets in [0, 1] (multi-label style, like BCEWithLogitsLoss expects)
    targets = jax.random.uniform(k2, (batch, num_classes), dtype=jnp.float32)

    out = bce_with_logits_loss(logits, targets)
    out = jax.block_until_ready(out)
    ref = bce_with_logits_loss_ref(logits, targets)
    assert out.shape == logits.shape
    assert jnp.allclose(out, ref, atol=1e-5, rtol=1e-5), "mismatch vs reference"

    # Exercise the padding / non-divisible path with an odd shape.
    logits2 = jax.random.normal(k3, (7, 33), dtype=jnp.float32) * 3.0
    targets2 = jax.random.uniform(k4, (7, 33), dtype=jnp.float32)
    out2 = jax.block_until_ready(bce_with_logits_loss(logits2, targets2))
    ref2 = bce_with_logits_loss_ref(logits2, targets2)
    assert out2.shape == logits2.shape
    assert jnp.allclose(out2, ref2, atol=1e-5, rtol=1e-5), "mismatch vs reference (odd shape)"

    # Larger case exercising the lane-divisible zero-copy path + ragged final
    # block handled by boundary clipping (rows not a multiple of block_rows).
    logits3 = jax.random.normal(k3, (130, 512), dtype=jnp.float32)
    targets3 = jax.random.uniform(k4, (130, 512), dtype=jnp.float32)
    out3 = jax.block_until_ready(bce_with_logits_loss(logits3, targets3))
    ref3 = bce_with_logits_loss_ref(logits3, targets3)
    assert out3.shape == logits3.shape
    assert jnp.allclose(out3, ref3, atol=1e-5, rtol=1e-5), "mismatch vs reference (clipped)"

    print("KERNEL_OK")
</pallas_src>

<mosaic_0001>
module attributes {stable_mosaic.version = 11 : i64} {
  func.func @_bce_logits_kernel(%arg0: i32, %arg1: memref<8x512xf32, #tpu.memory_space<vmem>>, %arg2: memref<8x512xf32, #tpu.memory_space<vmem>>, %arg3: memref<8x512xf32, #tpu.memory_space<vmem>>) attributes {dimension_semantics = [#tpu.dimension_semantics<parallel>], iteration_bounds = array<i64: 1>, scalar_prefetch = 0 : i64, scratch_operands = 0 : i64, tpu.core_type = #tpu.core_type<tc>, window_params = [{transform_indices = @transform_0, window_bounds = array<i64: 8, 512>}, {transform_indices = @transform_1, window_bounds = array<i64: 8, 512>}, {transform_indices = @transform_2, window_bounds = array<i64: 8, 512>}]} {
    %c0 = arith.constant 0 : index
    %c0_0 = arith.constant 0 : index
    %0 = vector.load %arg1[%c0, %c0_0] : memref<8x512xf32, #tpu.memory_space<vmem>>, vector<8x512xf32>
    %c0_1 = arith.constant 0 : index
    %c0_2 = arith.constant 0 : index
    %1 = vector.load %arg2[%c0_1, %c0_2] : memref<8x512xf32, #tpu.memory_space<vmem>>, vector<8x512xf32>
    %cst = arith.constant 0.000000e+00 : f32
    %2 = vector.broadcast %cst : f32 to vector<8x512xf32>
    %3 = arith.maximumf %0, %2 : vector<8x512xf32>
    %4 = arith.mulf %0, %1 : vector<8x512xf32>
    %5 = arith.subf %3, %4 : vector<8x512xf32>
    %6 = math.absf %0 : vector<8x512xf32>
    %cst_3 = arith.constant 0.000000e+00 : f32
    %7 = vector.broadcast %cst_3 : f32 to vector<8x512xf32>
    %8 = arith.subf %7, %6 : vector<8x512xf32>
    %9 = math.exp %8 : vector<8x512xf32>
    %10 = math.log1p %9 : vector<8x512xf32>
    %11 = arith.addf %5, %10 : vector<8x512xf32>
    %c0_4 = arith.constant 0 : index
    %c0_5 = arith.constant 0 : index
    %12 = vector.load %arg3[%c0_4, %c0_5] : memref<8x512xf32, #tpu.memory_space<vmem>>, vector<8x512xf32>
    tpu.vector_store %arg3[%c0_4, %c0_5], %11 {strides = array<i32>} : memref<8x512xf32, #tpu.memory_space<vmem>>, vector<8x512xf32>,
    return
  }
  func.func @transform_0(%arg0: i32) -> (i32, i32) {
    %c0_i32 = arith.constant 0 : i32
    %c0_i32_0 = arith.constant 0 : i32
    return %arg0, %c0_i32 : i32, i32
  }
  func.func @transform_1(%arg0: i32) -> (i32, i32) {
    %c0_i32 = arith.constant 0 : i32
    %c0_i32_0 = arith.constant 0 : i32
    return %arg0, %c0_i32 : i32, i32
  }
  func.func @transform_2(%arg0: i32) -> (i32, i32) {
    %c0_i32 = arith.constant 0 : i32
    %c0_i32_0 = arith.constant 0 : i32
    return %arg0, %c0_i32 : i32, i32
  }
}

</mosaic_0001>

<bundles_post_ra>
// kernel: tpu_custom_call.1
= control target key start
LH: loop header
LB: loop body
LE: loop exit
PB: predicated region body
PF: predicated region fallthrough
CT: control target
= control target key end

     0   :  { %7 = vsyncpa [#allocation3], 0  ;;  %s298_s0 = inlined_call_operand.hbm [shape: f32[8,512], index: 0, kind: input, shape index: {}]   ;;  %s299_s1 = inlined_call_operand.hbm [shape: f32[8,512], index: 1, kind: input, shape index: {}]   ;;  %s300_s2 = inlined_call_operand.hbm [shape: f32[8,512], index: 2, kind: output, shape index: {}]  }
   0x1   :  { %8 = vsyncpa [#allocation6], 0 }
   0x2   :  { %9 = vsyncpa [#allocation4], 0  ;;  %s223_s9 = smov [#allocation2]   ;;  %s224_s11 = smov [#allocation5]  }
   0x3   :  { %s16_s10 = sshll.u32 %s223_s9, 4  ;;  %s26_s12 = sshll.u32 %s224_s11, 4  ;;  %s17_s10 = int_to_ptr.vmem [resolvable:$true] %s16_s10  ;;  %s27_s12 = int_to_ptr.vmem [resolvable:$true] %s26_s12 }
   0x4   :  { %s151_s15 = scalar_lea.hbm %s298_s0, 512 }
   0x5   :  { %p152_p0 = scmp.ne.s32.totalorder %s298_s0, %s151_s15  ;;  %p155_p1 = scmp.lt.u32.totalorder %s151_s15, %s298_s0 }
   0x7   :  { %p157_p2 = pnand %p155_p1, %p152_p0 }
   0x9   :  { %160 = shalt.err (!%p157_p2)
}
   0xa   :  { %s161_s20 = scalar_lea.vmem %s17_s10, 512  ;;  %p166_p4 = scmp.lt.s32.totalorder %s17_s10, %s17_s10 }
   0xb   :  { %p162_p3 = scmp.ne.s32.totalorder %s17_s10, %s161_s20  ;;  %p167_p5 = scmp.lt.s32.totalorder %s161_s20, %s161_s20 }
   0xd   :  { %p168_p6 = por %p167_p5, %p166_p4 }
   0xf   :  { %p169_p7 = pnand %p168_p6, %p162_p3 }
  0x11   :  { %172 = shalt.err (!%p169_p7)
}
  0x12   :  { %19 = dma.hbm_to_vmem [thread:$0]  %s298_s0, 512, %s17_s10, [#allocation3]  }
  0x13   :  { %s173_s25 = scalar_lea.hbm %s299_s1, 512 }
  0x14   :  { %p174_p8 = scmp.ne.s32.totalorder %s299_s1, %s173_s25  ;;  %p177_p9 = scmp.lt.u32.totalorder %s173_s25, %s299_s1 }
  0x16   :  { %p179_p10 = pnand %p177_p9, %p174_p8 }
  0x18   :  { %182 = shalt.err (!%p179_p10)
}
  0x19   :  { %s183_s30 = scalar_lea.vmem %s27_s12, 512  ;;  %p188_p12 = scmp.lt.s32.totalorder %s27_s12, %s27_s12 }
  0x1a   :  { %p184_p11 = scmp.ne.s32.totalorder %s27_s12, %s183_s30  ;;  %p189_p13 = scmp.lt.s32.totalorder %s183_s30, %s183_s30 }
  0x1c   :  { %p190_p0 = por %p189_p13, %p188_p12 }
  0x1e   :  { %p191_p1 = pnand %p190_p0, %p184_p11 }
  0x20   :  { %194 = shalt.err (!%p191_p1)
}
  0x21   :  { %29 = dma.hbm_to_vmem [thread:$0]  %s299_s1, 512, %s27_s12, [#allocation6]  }
  0x22   :  { %217 = dma.done.wait [#allocation3], 512  }
  0x23   :  { %218 = vsyncadd [#allocation3], 4294966784 }
  0x24   :  { %219 = dma.done.wait [#allocation6], 512  }
  0x25   :  { %220 = vsyncadd [#allocation6], 4294966784  ;;  %v36_v0 = vld [vmem:[#allocation2] sm:$0xff]  ;;  %v265_v1 = vld [vmem:[#allocation2 + $0x8] sm:$0xff]  ;;  %s225_s1 = smov [#allocation7]  }
  0x26   :  { %v56_v2 = vand.u32 2147483647, %v36_v0  ;;  %v267_v3 = vld [vmem:[#allocation2 + $0x10] sm:$0xff]  ;;  %v57_v4 = vand.u32 2147483647, %v265_v1  ;;  %v271_v7 = vld [vmem:[#allocation2 + $0x18] sm:$0xff] }
  0x27   :  { %v58_v5 = vand.u32 2147483647, %v267_v3  ;;  %v59_v11 = vand.u32 2147483647, %v271_v7  ;;  %v40_v24 = vld [vmem:[#allocation5] sm:$0xff]  ;;  %v41_v28 = vld [vmem:[#allocation5 + $0x8] sm:$0xff] }
  0x28   :  { %v60_v6 = vsub.f32 0.0, %v56_v2  ;;  %v61_v8 = vsub.f32 0.0, %v57_v4  ;;  %v44_v29 = vmax.f32 %v36_v0, 0.0  ;;  %v48_v30 = vmul.f32 %v40_v24, %v36_v0  ;;  %v42_v32 = vld [vmem:[#allocation5 + $0x10] sm:$0xff]  ;;  %v43_v40 = vld [vmem:[#allocation5 + $0x18] sm:$0xff]  ;;  %s122_s4 = sshll.u32 %s225_s1, 4  ;;  %s123_s4 = int_to_ptr.vmem [resolvable:$true] %s122_s4 }
  0x29   :  { %v62_v9 = vsub.f32 0.0, %v58_v5  ;;  %v63_v14 = vsub.f32 0.0, %v59_v11  ;;  %v45_v36 = vmax.f32 %v265_v1, 0.0  ;;  %v49_v37 = vmul.f32 %v41_v28, %v265_v1  ;;  %s195_s5 = scalar_lea.vmem %s123_s4, 512  ;;  %p200_p3 = scmp.lt.s32.totalorder %s123_s4, %s123_s4 }
  0x2a   :  { %v64_v10 = vmul.f32 1.442695, %v60_v6  ;;  %v66_v12 = vmul.f32 1.442695, %v61_v8  ;;  %v46_v41 = vmax.f32 %v267_v3, 0.0  ;;  %v50_v42 = vmul.f32 %v42_v32, %v267_v3  ;;  %p196_p2 = scmp.ne.s32.totalorder %s123_s4, %s195_s5  ;;  %p201_p4 = scmp.lt.s32.totalorder %s195_s5, %s195_s5 }
  0x2b   :  { %v68_v13 = vmul.f32 1.442695, %v62_v9  ;;  %v70_v15 = vmul.f32 1.442695, %v63_v14  ;;  %v52_v44 = vsub.f32 %v44_v29, %v48_v30  ;;  %v47_v46 = vmax.f32 %v271_v7, 0.0 }
  0x2c   :  { %135 = vpow2.f32 %v64_v10  ;;  %v51_v51 = vmul.f32 %v43_v40, %v271_v7  ;;  %v53_v55 = vsub.f32 %v45_v36, %v49_v37  ;;  %v54_v59 = vsub.f32 %v46_v41, %v50_v42  ;;  %p202_p5 = por %p201_p4, %p200_p3 }
  0x2d   :  { %137 = vpow2.f32 %v66_v12 }
  0x2e   :  { %139 = vpow2.f32 %v68_v13  ;;  %v55_v2 = vsub.f32 %v47_v46, %v51_v51  ;;  %p203_p6 = pnand %p202_p5, %p196_p2 }
  0x2f   :  { %141 = vpow2.f32 %v70_v15 }
  0x36   :  { %v136_v16 = vpop.eup %135 }
  0x37   :  { %v138_v17 = vpop.eup %137  ;;  %v72_v18 = vadd.f32 1.0, %v136_v16  ;;  %v75_v23 = vmul.f32 -0.5, %v136_v16  ;;  %v78_v34 = vand.u32 2147483647, %v136_v16 }
  0x38   :  { %v140_v19 = vpop.eup %139  ;;  %v81_v20 = vadd.f32 1.0, %v138_v17  ;;  %v84_v25 = vmul.f32 -0.5, %v138_v17  ;;  %v87_v38 = vand.u32 2147483647, %v138_v17 }
  0x39   :  { %143 = vlog2.f32 %v72_v18  ;;  %v90_v21 = vadd.f32 1.0, %v140_v19  ;;  %v142_v22 = vpop.eup %141  ;;  %v93_v27 = vmul.f32 -0.5, %v140_v19  ;;  %v76_v31 = vadd.f32 1.0, %v75_v23 }
  0x3a   :  { %145 = vlog2.f32 %v81_v20  ;;  %v99_v26 = vadd.f32 1.0, %v142_v22  ;;  %v102_v33 = vmul.f32 -0.5, %v142_v22  ;;  %v85_v35 = vadd.f32 1.0, %v84_v25 }
  0x3b   :  { %147 = vlog2.f32 %v90_v21  ;;  %v94_v39 = vadd.f32 1.0, %v93_v27  ;;  %v96_v43 = vand.u32 2147483647, %v140_v19  ;;  %v77_v45 = vmul.f32 %v136_v16, %v76_v31 }
  0x3c   :  { %149 = vlog2.f32 %v99_v26  ;;  %v103_v47 = vadd.f32 1.0, %v102_v33  ;;  %vm279_vm0 = vcmp.lt.f32.partialorder %v78_v34, 0.0004427343  ;;  %v86_v50 = vmul.f32 %v138_v17, %v85_v35 }
  0x3d   :  { %v105_v52 = vand.u32 2147483647, %v142_v22  ;;  %vm88_vm1 = vcmp.lt.f32.partialorder %v87_v38, 0.0004427343  ;;  %v95_v56 = vmul.f32 %v140_v19, %v94_v39  ;;  %vm97_vm2 = vcmp.lt.f32.partialorder %v96_v43, 0.0004427343 }
  0x3e   :  { %v104_v62 = vmul.f32 %v142_v22, %v103_v47 }
  0x3f   :  { %vm106_vm3 = vcmp.lt.f32.partialorder %v105_v52, 0.0004427343 }
  0x43   :  { %v144_v48 = vpop.eup %143 }
  0x44   :  { %v146_v53 = vpop.eup %145  ;;  %v74_v54 = vmul.f32 0.6931472, %v144_v48 }
  0x45   :  { %v148_v57 = vpop.eup %147  ;;  %v83_v58 = vmul.f32 0.6931472, %v146_v53 }
  0x46   :  { %v80_v60 = vsel %vm279_vm0, %v77_v45, %v74_v54  ;;  %v92_v61 = vmul.f32 0.6931472, %v148_v57  ;;  %v150_v63 = vpop.eup %149 }
  0x47   :  { %v108_v0 = vadd.f32 %v80_v60, %v52_v44  ;;  %v89_v1 = vsel %vm88_vm1, %v86_v50, %v83_v58  ;;  %v101_v5 = vmul.f32 0.6931472, %v150_v63 }
  0x48   :  { %v109_v3 = vadd.f32 %v89_v1, %v53_v55  ;;  %v98_v4 = vsel %vm97_vm2, %v95_v56, %v92_v61 }
  0x49   :  { %112 = vst [vmem:[#allocation7] sm:$0xff] %v108_v0  ;;  %v110_v6 = vadd.f32 %v98_v4, %v54_v59  ;;  %v107_v7 = vsel %vm106_vm3, %v104_v62, %v101_v5 }
  0x4a   :  { %113 = vst [vmem:[#allocation7 + $0x8] sm:$0xff] %v109_v3  ;;  %v111_v8 = vadd.f32 %v107_v7, %v55_v2 }
  0x4b   :  { %114 = vst [vmem:[#allocation7 + $0x10] sm:$0xff] %v110_v6 }
  0x4c   :  { %115 = vst [vmem:[#allocation7 + $0x18] sm:$0xff] %v111_v8 }
  0x4d   :  { %206 = shalt.err (!%p203_p6)
}
  0x4e   :  { %s207_s8 = scalar_lea.hbm %s300_s2, 512 }
  0x4f   :  { %p208_p7 = scmp.ne.s32.totalorder %s300_s2, %s207_s8  ;;  %p211_p8 = scmp.lt.u32.totalorder %s207_s8, %s300_s2 }
  0x51   :  { %p213_p9 = pnand %p211_p8, %p208_p7 }
  0x53   :  { %216 = shalt.err (!%p213_p9)
}
  0x54   :  { %125 = dma.vmem_to_hbm [thread:$0]  %s123_s4, 512, %s300_s2, [#allocation4]  }
  0x55   :  { %221 = dma.done.wait [#allocation4], 512  }
  0x56   :  { %222 = vsyncadd [#allocation4], 4294966784 }
  0x57   :  { %129 = vsyncpa [#allocation3], 1 }
  0x58   :  { %130 = vsyncpa [#allocation6], 1 }
  0x59   :  { %131 = vsyncpa [#allocation4], 1 }

</bundles_post_ra>
